<compile_context>
chip_gen: v7x
topology: tpu7x:2x2x1
jax: 0.10.0
libtpu: 0.0.40
codegen_flags: <defaults>
</compile_context>

<pallas_src>
import functools

import jax
import jax.numpy as jnp
from jax import lax
from jax.experimental import pallas as pl
from jax.experimental.pallas import tpu as pltpu

D = 10                       # input dim
K = D * (D - 1) // 2         # 45
NUM_HIDDEN = 2 * K           # 90
BATCH = 8

_LANE = 128
_ROW_TILE_MAX = 256          # >=256 rows/step keeps the 256-wide MXU fed;
                             # 256x128xf32 tiles are ~128 KiB -> trivially
                             # within the 32 MiB scoped-VMEM default on every
                             # generation (incl. 64 MiB-total v7x).


def _round_up(x, m):
    return (x + m - 1) // m * m


def _model_kernel(x_ref, we_ref, wp_ref, bias_ref, out_ref, *, split, row_tile):
    """One row tile of extractor -> ReLU -> predictor -> row-normalize."""
    x = x_ref[...]            # (TM, D)
    we = we_ref[...]          # (D, HP)   VMEM-resident across grid steps
    wp = wp_ref[...]          # (HP, HP)  VMEM-resident across grid steps
    be = bias_ref[0:1, :]     # (1, HP)   extractor bias (lane-padded with 0)
    bp = bias_ref[1:2, :]     # (1, HP)   predictor bias (lane-padded with 0)

    # Extractor + ReLU. Padded lanes: relu(x @ 0 + 0) == 0, norms unaffected.
    h = jnp.maximum(
        jnp.dot(x, we, preferred_element_type=jnp.float32) + be, 0.0)

    # Predictor over ALL rows (extra view-2 rows are nearly free on the MXU);
    # this avoids any in-kernel slice / concatenate relayout.
    p = jnp.dot(h, wp, preferred_element_type=jnp.float32) + bp

    # Per-row select: global rows < split are view-1 (predictor output),
    # the rest are view-2 (detached extractor output).
    row0 = pl.program_id(0) * row_tile
    rows = row0 + lax.broadcasted_iota(jnp.int32, h.shape, 0)
    sel = jnp.where(rows < split, p, h)

    # Fused normalization: one EUP rsqrt + VPU multiply, single dense store.
    # Note: an all-zero row gives rsqrt(0)=inf -> NaN, which matches PyTorch's
    # own divide-by-zero-norm behaviour (no epsilon in the reference module).
    sumsq = jnp.sum(sel * sel, axis=1, keepdims=True)
    out_ref[...] = (sel * lax.rsqrt(sumsq)).astype(out_ref.dtype)


def prepare_params(w_ext, b_ext, w_pred, b_pred):
    """Pad/merge parameters ONCE (hoisted out of the per-call forward).

    w_ext: (D, H), b_ext: (H,), w_pred: (H, H), b_pred: (H,)
    (weights already transposed to (in_features, out_features)).
    """
    d_in, h = w_ext.shape
    hp = _round_up(h, _LANE)
    we_p = jnp.zeros((d_in, hp), jnp.float32).at[:, :h].set(w_ext)
    wp_p = jnp.zeros((hp, hp), jnp.float32).at[:h, :h].set(w_pred)
    bias_p = (jnp.zeros((2, hp), jnp.float32)
              .at[0, :h].set(b_ext)
              .at[1, :h].set(b_pred))
    return we_p, wp_p, bias_p, h


def model_forward_stacked(x_stacked, params):
    """x_stacked: (R, D) f32, view-1 rows in [0, R//2), view-2 rows in [R//2, R)."""
    we_p, wp_p, bias_p, h = params
    r, d_in = x_stacked.shape
    hp = we_p.shape[1]
    split = r // 2

    tm = min(_round_up(r, 8), _ROW_TILE_MAX)
    r_pad = _round_up(r, tm)
    x_p = (x_stacked if r_pad == r
           else jnp.zeros((r_pad, d_in), x_stacked.dtype).at[:r, :].set(x_stacked))

    grid = (r_pad // tm,)
    kernel = functools.partial(_model_kernel, split=split, row_tile=tm)

    cost = pl.CostEstimate(
        flops=2 * r_pad * d_in * hp + 2 * r_pad * hp * hp,
        transcendentals=r_pad,
        bytes_accessed=4 * (x_p.size + we_p.size + wp_p.size + bias_p.size
                            + r_pad * hp),
    )

    out = pl.pallas_call(
        kernel,
        out_shape=jax.ShapeDtypeStruct((r_pad, hp), jnp.float32),
        grid=grid,
        in_specs=[
            # x: a fresh row tile per grid step.
            pl.BlockSpec((tm, d_in), lambda n: (n, 0)),
            # Weights / merged bias: constant block index -> DMA'd once,
            # VMEM-resident for the whole grid.
            pl.BlockSpec((d_in, hp), lambda n: (0, 0)),
            pl.BlockSpec((hp, hp), lambda n: (0, 0)),
            pl.BlockSpec((2, hp), lambda n: (0, 0)),
        ],
        out_specs=pl.BlockSpec((tm, hp), lambda n: (n, 0)),
        compiler_params=pltpu.CompilerParams(
            dimension_semantics=("parallel",)),   # shards row tiles on v7x's 2 TCs
        cost_estimate=cost,
    )(x_p, we_p, wp_p, bias_p)

    # TODO(synk): branch2 is .detach()'ed in PyTorch; if autodiff is ever taken
    # through this forward, wrap it in jax.custom_vjp with stop_gradient on the
    # view-2 path.
    branch1 = out[:split, :h]
    branch2 = out[split:r, :h]
    return branch1, branch2


def model_forward(x1, x2, params):
    """Convenience wrapper matching Model.forward(x1, x2).

    NOTE: if called repeatedly, produce the stacked (2B, D) view in the data
    pipeline and call model_forward_stacked directly to hoist this concat.
    """
    return model_forward_stacked(jnp.concatenate([x1, x2], axis=0), params)


def _reference(x1, x2, w_ext, b_ext, w_pred, b_pred):
    h1 = jnp.maximum(x1 @ w_ext + b_ext, 0.0)
    h2 = jnp.maximum(x2 @ w_ext + b_ext, 0.0)
    p1 = h1 @ w_pred + b_pred
    ref1 = p1 / jnp.linalg.norm(p1, axis=1, keepdims=True)
    ref2 = h2 / jnp.linalg.norm(h2, axis=1, keepdims=True)
    return ref1, ref2


if __name__ == "__main__":
    key = jax.random.PRNGKey(0)
    k1, k2, k3, k4, k5, k6, k7, k8 = jax.random.split(key, 8)

    # Deterministic parameter init mimicking nn.Linear's U(-1/sqrt(fan_in), .)
    lim_e = 1.0 / (D ** 0.5)
    lim_p = 1.0 / (NUM_HIDDEN ** 0.5)
    # Stored as (in_features, out_features) == PyTorch weight.T
    w_ext = jax.random.uniform(k1, (D, NUM_HIDDEN), jnp.float32, -lim_e, lim_e)
    b_ext = jax.random.uniform(k2, (NUM_HIDDEN,), jnp.float32, -lim_e, lim_e)
    w_pred = jax.random.uniform(k3, (NUM_HIDDEN, NUM_HIDDEN), jnp.float32,
                                -lim_p, lim_p)
    b_pred = jax.random.uniform(k4, (NUM_HIDDEN,), jnp.float32, -lim_p, lim_p)

    # Pad / merge parameters ONCE (hoisted out of the forward).
    params = prepare_params(w_ext, b_ext, w_pred, b_pred)

    # --- Single forward at the module's shapes (batchsize=8, d=10) ---------
    x1 = jax.random.uniform(k5, (BATCH, D), jnp.float32)
    x2 = jax.random.uniform(k6, (BATCH, D), jnp.float32)

    branch1, branch2 = model_forward(x1, x2, params)
    jax.block_until_ready((branch1, branch2))

    ref1, ref2 = _reference(x1, x2, w_ext, b_ext, w_pred, b_pred)
    assert branch1.shape == (BATCH, NUM_HIDDEN)
    assert branch2.shape == (BATCH, NUM_HIDDEN)
    assert jnp.allclose(branch1, ref1, atol=1e-5, rtol=1e-5)
    assert jnp.allclose(branch2, ref2, atol=1e-5, rtol=1e-5)

    # --- Batched path: many stacked forwards behind one grid ---------------
    # 256 rows per view -> 512 stacked rows -> grid=(2,) with 256-row tiles;
    # weights stay VMEM-resident across both steps.
    MB = 256
    xb1 = jax.random.uniform(k7, (MB, D), jnp.float32)
    xb2 = jax.random.uniform(k8, (MB, D), jnp.float32)
    bb1, bb2 = model_forward_stacked(jnp.concatenate([xb1, xb2], axis=0), params)
    jax.block_until_ready((bb1, bb2))

    rb1, rb2 = _reference(xb1, xb2, w_ext, b_ext, w_pred, b_pred)
    assert bb1.shape == (MB, NUM_HIDDEN) and bb2.shape == (MB, NUM_HIDDEN)
    assert jnp.allclose(bb1, rb1, atol=1e-5, rtol=1e-5)
    assert jnp.allclose(bb2, rb2, atol=1e-5, rtol=1e-5)

    print("KERNEL_OK")
</pallas_src>

<mosaic_0001>
module attributes {stable_mosaic.version = 11 : i64} {
  func.func @_model_kernel(%arg0: i32, %arg1: memref<16x10xf32, #tpu.memory_space<vmem>>, %arg2: memref<10x128xf32, #tpu.memory_space<vmem>>, %arg3: memref<128x128xf32, #tpu.memory_space<vmem>>, %arg4: memref<2x128xf32, #tpu.memory_space<vmem>>, %arg5: memref<16x128xf32, #tpu.memory_space<vmem>>) attributes {dimension_semantics = [#tpu.dimension_semantics<parallel>], iteration_bounds = array<i64: 1>, scalar_prefetch = 0 : i64, scratch_operands = 0 : i64, tpu.core_type = #tpu.core_type<tc>, window_params = [{transform_indices = @transform_0, window_bounds = array<i64: 16, 10>}, {pipeline_mode = #tpu.pipeline_mode<synchronous>, transform_indices = @transform_1, window_bounds = array<i64: 10, 128>}, {pipeline_mode = #tpu.pipeline_mode<synchronous>, transform_indices = @transform_2, window_bounds = array<i64: 128, 128>}, {pipeline_mode = #tpu.pipeline_mode<synchronous>, transform_indices = @transform_3, window_bounds = array<i64: 2, 128>}, {transform_indices = @transform_4, window_bounds = array<i64: 16, 128>}]} {
    %c0 = arith.constant 0 : index
    %c0_0 = arith.constant 0 : index
    %0 = vector.load %arg1[%c0, %c0_0] : memref<16x10xf32, #tpu.memory_space<vmem>>, vector<16x10xf32>
    %c0_1 = arith.constant 0 : index
    %c0_2 = arith.constant 0 : index
    %1 = vector.load %arg2[%c0_1, %c0_2] : memref<10x128xf32, #tpu.memory_space<vmem>>, vector<10x128xf32>
    %c0_3 = arith.constant 0 : index
    %c0_4 = arith.constant 0 : index
    %2 = vector.load %arg3[%c0_3, %c0_4] : memref<128x128xf32, #tpu.memory_space<vmem>>, vector<128x128xf32>
    %c0_5 = arith.constant 0 : index
    %c0_6 = arith.constant 0 : index
    %3 = vector.load %arg4[%c0_5, %c0_6] : memref<2x128xf32, #tpu.memory_space<vmem>>, vector<1x128xf32>
    %c1 = arith.constant 1 : index
    %c0_7 = arith.constant 0 : index
    %4 = vector.load %arg4[%c1, %c0_7] : memref<2x128xf32, #tpu.memory_space<vmem>>, vector<1x128xf32>
    %cst = arith.constant dense<0.000000e+00> : vector<16x128xf32>
    %5 = tpu.matmul %0, %1, %cst {dimension_numbers = #tpu.dot_dimension_numbers<[1], [0], [0], [1], [0, 0, 1, 1], [], []>} : vector<16x10xf32>, vector<10x128xf32>, vector<16x128xf32> -> vector<16x128xf32>
    %6 = vector.broadcast %3 : vector<1x128xf32> to vector<16x128xf32>
    %7 = arith.addf %5, %6 : vector<16x128xf32>
    %cst_8 = arith.constant 0.000000e+00 : f32
    %8 = vector.broadcast %cst_8 : f32 to vector<16x128xf32>
    %9 = arith.maximumf %7, %8 : vector<16x128xf32>
    %cst_9 = arith.constant dense<0.000000e+00> : vector<16x128xf32>
    %10 = tpu.matmul %9, %2, %cst_9 {dimension_numbers = #tpu.dot_dimension_numbers<[1], [0], [0], [1], [0, 0, 1, 1], [], []>} : vector<16x128xf32>, vector<128x128xf32>, vector<16x128xf32> -> vector<16x128xf32>
    %11 = vector.broadcast %4 : vector<1x128xf32> to vector<16x128xf32>
    %12 = arith.addf %10, %11 : vector<16x128xf32>
    %c16_i32 = arith.constant 16 : i32
    %13 = arith.muli %arg0, %c16_i32 : i32
    %14 = tpu.iota {dimensions = array<i32: 0>} : vector<16x128xi32>
    %15 = vector.broadcast %13 : i32 to vector<16x128xi32>
    %16 = arith.addi %15, %14 : vector<16x128xi32>
    %c8_i32 = arith.constant 8 : i32
    %17 = vector.broadcast %c8_i32 : i32 to vector<16x128xi32>
    %18 = arith.cmpi slt, %16, %17 : vector<16x128xi32>
    %19 = arith.select %18, %12, %9 : vector<16x128xi1>, vector<16x128xf32>
    %20 = arith.mulf %19, %19 : vector<16x128xf32>
    %cst_10 = arith.constant dense<0.000000e+00> : vector<16xf32>
    %21 = vector.multi_reduction <add>, %20, %cst_10 [1] : vector<16x128xf32> to vector<16xf32>
    %22 = vector.shape_cast %21 : vector<16xf32> to vector<16x1xf32>
    %23 = math.rsqrt %22 : vector<16x1xf32>
    %24 = vector.broadcast %23 : vector<16x1xf32> to vector<16x128xf32>
    %25 = arith.mulf %19, %24 : vector<16x128xf32>
    %c0_11 = arith.constant 0 : index
    %c0_12 = arith.constant 0 : index
    %26 = vector.load %arg5[%c0_11, %c0_12] : memref<16x128xf32, #tpu.memory_space<vmem>>, vector<16x128xf32>
    tpu.vector_store %arg5[%c0_11, %c0_12], %25 {strides = array<i32>} : memref<16x128xf32, #tpu.memory_space<vmem>>, vector<16x128xf32>,
    return
  }
  func.func @transform_0(%arg0: i32) -> (i32, i32) {
    %c0_i32 = arith.constant 0 : i32
    %c0_i32_0 = arith.constant 0 : i32
    return %arg0, %c0_i32 : i32, i32
  }
  func.func @transform_1(%arg0: i32) -> (i32, i32) {
    %c0_i32 = arith.constant 0 : i32
    %c0_i32_0 = arith.constant 0 : i32
    %c0_i32_1 = arith.constant 0 : i32
    return %c0_i32, %c0_i32_0 : i32, i32
  }
  func.func @transform_2(%arg0: i32) -> (i32, i32) {
    %c0_i32 = arith.constant 0 : i32
    %c0_i32_0 = arith.constant 0 : i32
    %c0_i32_1 = arith.constant 0 : i32
    return %c0_i32, %c0_i32_0 : i32, i32
  }
  func.func @transform_3(%arg0: i32) -> (i32, i32) {
    %c0_i32 = arith.constant 0 : i32
    %c0_i32_0 = arith.constant 0 : i32
    %c0_i32_1 = arith.constant 0 : i32
    return %c0_i32, %c0_i32_0 : i32, i32
  }
  func.func @transform_4(%arg0: i32) -> (i32, i32) {
    %c0_i32 = arith.constant 0 : i32
    %c0_i32_0 = arith.constant 0 : i32
    return %arg0, %c0_i32 : i32, i32
  }
}

</mosaic_0001>

<bundles_post_ra>
// kernel: tpu_custom_call.1
= control target key start
LH: loop header
LB: loop body
LE: loop exit
PB: predicated region body
PF: predicated region fallthrough
CT: control target
= control target key end

     0   :  { %9 = vsyncpa [#allocation3], 0  ;;  %s612_s0 = inlined_call_operand.hbm [shape: f32[16,10], index: 0, kind: input, shape index: {}]   ;;  %s613_s1 = inlined_call_operand.hbm [shape: f32[10,128], index: 1, kind: input, shape index: {}]   ;;  %s614_s2 = inlined_call_operand.hbm [shape: f32[128,128], index: 2, kind: input, shape index: {}]   ;;  %s615_s3 = inlined_call_operand.vmem [shape: f32[2,128], index: 3, kind: input, shape index: {}]   ;;  %s616_s4 = inlined_call_operand.hbm [shape: f32[16,128], index: 4, kind: output, shape index: {}]  }
   0x1   :  { %10 = vsyncpa [#allocation6], 0 }
   0x2   :  { %11 = vsyncpa [#allocation4], 0  ;;  %s505_s15 = smov [#allocation5]   ;;  %s506_s17 = smov [#allocation2]  }
   0x3   :  { %s29_s16 = sshll.u32 %s505_s15, 4  ;;  %s17_s18 = sshll.u32 %s506_s17, 4  ;;  %s30_s16 = int_to_ptr.vmem [resolvable:$true] %s29_s16  ;;  %s537_s18 = int_to_ptr.vmem [resolvable:$true] %s17_s18 }
   0x4   :  { %s411_s21 = scalar_lea.hbm %s613_s1, 256 }
   0x5   :  { %p412_p0 = scmp.ne.s32.totalorder %s613_s1, %s411_s21  ;;  %p415_p1 = scmp.lt.u32.totalorder %s411_s21, %s613_s1 }
   0x7   :  { %p417_p2 = pnand %p415_p1, %p412_p0 }
   0x9   :  { %420 = shalt.err (!%p417_p2)
}
   0xa   :  { %s421_s26 = scalar_lea.vmem %s30_s16, 256  ;;  %p426_p4 = scmp.lt.s32.totalorder %s30_s16, %s30_s16 }
   0xb   :  { %p422_p3 = scmp.ne.s32.totalorder %s30_s16, %s421_s26  ;;  %p427_p5 = scmp.lt.s32.totalorder %s421_s26, %s421_s26 }
   0xd   :  { %p428_p6 = por %p427_p5, %p426_p4 }
   0xf   :  { %p429_p7 = pnand %p428_p6, %p422_p3 }
  0x11   :  { %432 = shalt.err (!%p429_p7)
}
  0x12   :  { %s507_s27 = smov 128   ;;  %s508_s28 = smov 8  }
  0x13   :  { %35 = dma.hbm_to_vmem [thread:$0]  %s613_s1, 256, %s30_s16, [#allocation6], %s507_s27, %s507_s27, %s508_s28  }
  0x14   :  { %s433_s7 = scalar_lea.hbm %s612_s0, 256 }
  0x15   :  { %p434_p8 = scmp.ne.s32.totalorder %s612_s0, %s433_s7  ;;  %p437_p9 = scmp.lt.u32.totalorder %s433_s7, %s612_s0 }
  0x17   :  { %p439_p10 = pnand %p437_p9, %p434_p8 }
  0x19   :  { %442 = shalt.err (!%p439_p10)
}
  0x1a   :  { %s443_s12 = scalar_lea.vmem %s537_s18, 256  ;;  %p448_p12 = scmp.lt.s32.totalorder %s537_s18, %s537_s18 }
  0x1b   :  { %p444_p11 = scmp.ne.s32.totalorder %s537_s18, %s443_s12  ;;  %p449_p13 = scmp.lt.s32.totalorder %s443_s12, %s443_s12 }
  0x1d   :  { %p450_p0 = por %p449_p13, %p448_p12 }
  0x1f   :  { %p451_p1 = pnand %p450_p0, %p444_p11 }
  0x21   :  { %454 = shalt.err (!%p451_p1)
}
  0x22   :  { %23 = dma.hbm_to_vmem [thread:$0]  %s612_s0, 256, %s537_s18, [#allocation3], %s507_s27, %s507_s27, %s508_s28  }
  0x23   :  { %s509_s14 = smov [#allocation7]   ;;  %s455_s19 = scalar_lea.hbm %s614_s2, 2048 }
  0x24   :  { %s41_s15 = sshll.u32 %s509_s14, 4  ;;  %p456_p2 = scmp.ne.s32.totalorder %s614_s2, %s455_s19  ;;  %s42_s15 = int_to_ptr.vmem [resolvable:$true] %s41_s15 }
  0x25   :  { %p459_p3 = scmp.lt.u32.totalorder %s455_s19, %s614_s2 }
  0x27   :  { %p461_p4 = pnand %p459_p3, %p456_p2 }
  0x29   :  { %464 = shalt.err (!%p461_p4)
}
  0x2a   :  { %s465_s24 = scalar_lea.vmem %s42_s15, 2048  ;;  %p470_p6 = scmp.lt.s32.totalorder %s42_s15, %s42_s15 }
  0x2b   :  { %p466_p5 = scmp.ne.s32.totalorder %s42_s15, %s465_s24  ;;  %p471_p7 = scmp.lt.s32.totalorder %s465_s24, %s465_s24 }
  0x2d   :  { %p472_p8 = por %p471_p7, %p470_p6 }
  0x2f   :  { %p473_p9 = pnand %p472_p8, %p466_p5 }
  0x31   :  { %476 = shalt.err (!%p473_p9)
}
  0x32   :  { %47 = dma.hbm_to_vmem [thread:$0]  %s614_s2, 2048, %s42_s15, [#allocation6], %s507_s27, %s507_s27, %s508_s28  }
  0x33   :  { %499 = dma.done.wait [#allocation3], 256  }
  0x34   :  { %500 = vsyncadd [#allocation3], 4294967040 }
  0x35   :  { %501 = dma.done.wait [#allocation6], 2304  }
  0x36   :  { %502 = vsyncadd [#allocation6], 4294964992  ;;  %vm92_vm0 = vcmask 1041408   ;;  %vm85_vm1 = vcmask 80896   ;;  %vm510_vm2 = vmmov 1   ;;  %v61_v0 = vld [vmem:[#allocation5] sm:$0xff] }
  0x37   :  { %vm363_vm3 = vmpackc.low %vm92_vm0, %vm510_vm2  ;;  %v62_v1 = vld [vmem:[#allocation5 + $0x8] sm:$0x3]  ;;  %v59_v2 = vld [vmem:[#allocation2] sm:$0xff]  ;;  %s511_s30 = smov [#allocation8]  }
  0x38   :  { %v362_v3 = vpack.c.bf16 %v62_v1, %v61_v0  ;;  %324 = vmatprep.mubr.msk.f32.mxu0 %vm85_vm1, %v59_v2  ;;  %v63_v4 = vld [vmem:[#allocation7] sm:$0xff]  ;;  %v64_v5 = vld [vmem:[#allocation7 + $0x8] sm:$0xff]  ;;  %v65_v7 = vld [vmem:[#allocation7 + $0x10] sm:$0xff]  ;;  %s280_s5 = sshll.u32 %s511_s30, 4  ;;  %s281_s5 = int_to_ptr.vmem [resolvable:$true] %s280_s5 }
  0x39   :  { %v368_v6 = vpack.c.bf16 %v64_v5, %v63_v4  ;;  %v66_v8 = vld [vmem:[#allocation7 + $0x18] sm:$0xff]  ;;  %v67_v10 = vld [vmem:[#allocation7 + $0x20] sm:$0xff]  ;;  %v68_v11 = vld [vmem:[#allocation7 + $0x28] sm:$0xff]  ;;  %p482_p11 = scmp.lt.s32.totalorder %s281_s5, %s281_s5 }
  0x3a   :  { %364 = vmatprep.subr.msk.bf16.mxu0 %vm363_vm3, %v362_v3  ;;  %v372_v9 = vpack.c.bf16 %v66_v8, %v65_v7  ;;  %v60_v12 = vld [vmem:[#allocation2 + $0x8] sm:$0xff]  ;;  %v376_v13 = vpack.c.bf16 %v68_v11, %v67_v10  ;;  %v69_v14 = vld [vmem:[#allocation7 + $0x30] sm:$0xff]  ;;  %v70_v15 = vld [vmem:[#allocation7 + $0x38] sm:$0xff] }
  0x3b   :  { %367 = vmatpush3.bf16.msk.msra.mxu0 %vm363_vm3, %v362_v3  ;;  %369 = vmatprep.subr.bf16.mxu1 %v368_v6  ;;  %v380_v16 = vpack.c.bf16 %v70_v15, %v69_v14  ;;  %v71_v17 = vld [vmem:[#allocation7 + $0x40] sm:$0xff]  ;;  %v72_v18 = vld [vmem:[#allocation7 + $0x48] sm:$0xff]  ;;  %v73_v20 = vld [vmem:[#allocation7 + $0x50] sm:$0xff] }
  0x3c   :  { %371 = vmatpush3.bf16.msra.mxu1 %v368_v6  ;;  %v384_v19 = vpack.c.bf16 %v72_v18, %v71_v17  ;;  %v74_v21 = vld [vmem:[#allocation7 + $0x58] sm:$0xff]  ;;  %v75_v23 = vld [vmem:[#allocation7 + $0x60] sm:$0xff]  ;;  %v76_v24 = vld [vmem:[#allocation7 + $0x68] sm:$0xff] }
  0x3d   :  { %373 = vmatprep.subr.bf16.mxu1 %v372_v9  ;;  %v388_v22 = vpack.c.bf16 %v74_v21, %v73_v20  ;;  %v392_v25 = vpack.c.bf16 %v76_v24, %v75_v23  ;;  %v77_v26 = vld [vmem:[#allocation7 + $0x70] sm:$0xff]  ;;  %v78_v27 = vld [vmem:[#allocation7 + $0x78] sm:$0xff]  ;;  %v293_v29 = vld [vmem:[%s615_s3] ss:$0 sm:$0xff] }
  0x3e   :  { %325 = vmatmul.mubr.msk.f32.vlgmr.msra.gmra.mrb[0].mxu0 %vm85_vm1, %v60_v12  ;;  %v396_v28 = vpack.c.bf16 %v78_v27, %v77_v26  ;;  %v297_v36 = vld [vmem:[%s615_s3 + $0x1] ss:$0 sm:$0xff]  ;;  %s477_s3 = scalar_lea.vmem %s281_s5, 256 }
  0x3f   :  { %p478_p10 = scmp.ne.s32.totalorder %s281_s5, %s477_s3  ;;  %p483_p12 = scmp.lt.s32.totalorder %s477_s3, %s477_s3 }
  0x40   :  { %375 = vmatpush3.bf16.msra.mxu1 %v372_v9 }
  0x41   :  { %377 = vmatprep.subr.bf16.mxu1 %v376_v13  ;;  %p484_p13 = por %p483_p12, %p482_p11 }
  0x43   :  { %p485_p0 = pnand %p484_p13, %p478_p10 }
  0x44   :  { %379 = vmatpush3.bf16.msra.mxu1 %v376_v13 }
  0x45   :  { %381 = vmatprep.subr.bf16.mxu1 %v380_v16 }
  0x48   :  { %383 = vmatpush3.bf16.msra.mxu1 %v380_v16 }
  0x49   :  { %385 = vmatprep.subr.bf16.mxu1 %v384_v19 }
  0x4c   :  { %387 = vmatpush3.bf16.msra.mxu1 %v384_v19 }
  0x4d   :  { %389 = vmatprep.subr.bf16.mxu1 %v388_v22 }
  0x50   :  { %391 = vmatpush3.bf16.msra.mxu1 %v388_v22 }
  0x51   :  { %393 = vmatprep.subr.bf16.mxu1 %v392_v25 }
  0x54   :  { %395 = vmatpush3.bf16.msra.mxu1 %v392_v25 }
  0x55   :  { %397 = vmatprep.subr.bf16.mxu1 %v396_v28 }
  0x58   :  { %399 = vmatpush3.bf16.msra.mxu1 %v396_v28 }
 0x111   :  { %v326_v30 = vpop.f32.mrb[0].mxu0 }
 0x112   :  { %v168_v31 = vadd.f32 %v326_v30, %v293_v29  ;;  %v162_v32 = vpop.f32.mrb[1].mxu0 }
 0x113   :  { %v163_v33 = vadd.f32 %v293_v29, %v162_v32 }
 0x114   :  { %v172_v35 = vmax.f32 %v168_v31, 0.0 }
 0x115   :  { %v171_v34 = vmax.f32 %v163_v33, 0.0 }
 0x116   :  { %v264_v41 = vmul.f32 %v172_v35, %v172_v35 }
 0x117   :  { %359 = vmatprep.mubr.f32.mxu1 %v171_v34 }
 0x118   :  { %360 = vmatmul.mubr.f32.vlgmr.msra.gmra.mrb[0].mxu1 %v172_v35 }
 0x1eb   :  { %v361_v37 = vpop.f32.mrb[0].mxu1 }
 0x1ec   :  { %v243_v38 = vpop.f32.mrb[1].mxu1 }
 0x1ed   :  { %v244_v39 = vadd.f32 %v297_v36, %v243_v38 }
 0x1ef   :  { %v263_v40 = vmul.f32 %v244_v39, %v244_v39 }
 0x1f1   :  { %265 = vadd.xlane.f32.xlu0 %v263_v40 }
 0x1f5   :  { %267 = vadd.xlane.f32.xlu0 %v264_v41 }
 0x27e   :  { %v266_v42 = vpop.xlane.xlu0 %265 }
 0x27f   :  { %407 = vrsqrt.f32 %v266_v42 }
 0x282   :  { %v268_v43 = vpop.xlane.xlu0 %267 }
 0x283   :  { %409 = vrsqrt.f32 %v268_v43 }
 0x289   :  { %v408_v44 = vpop.eup %407 }
 0x28a   :  { %v271_v45 = vmul.f32 %v408_v44, %v244_v39 }
 0x28c   :  { %273 = vst [vmem:[#allocation8] sm:$0xff] %v271_v45 }
 0x28d   :  { %v410_v46 = vpop.eup %409 }
 0x28e   :  { %v272_v47 = vmul.f32 %v410_v46, %v172_v35 }
 0x290   :  { %274 = vst [vmem:[#allocation8 + $0x8] sm:$0xff] %v272_v47 }
 0x291   :  { %488 = shalt.err (!%p485_p0)
}
 0x292   :  { %s489_s8 = scalar_lea.hbm %s616_s4, 256 }
 0x293   :  { %p490_p1 = scmp.ne.s32.totalorder %s616_s4, %s489_s8  ;;  %p493_p2 = scmp.lt.u32.totalorder %s489_s8, %s616_s4 }
 0x295   :  { %p495_p3 = pnand %p493_p2, %p490_p1 }
 0x297   :  { %498 = shalt.err (!%p495_p3)
}
 0x298   :  { %286 = dma.vmem_to_hbm [thread:$0]  %s281_s5, 256, %s616_s4, [#allocation4], %s507_s27, %s507_s27, %s508_s28  }
 0x299   :  { %503 = dma.done.wait [#allocation4], 256  }
 0x29a   :  { %504 = vsyncadd [#allocation4], 4294967040 }
 0x29b   :  { %290 = vsyncpa [#allocation3], 1 }
 0x29c   :  { %291 = vsyncpa [#allocation6], 1 }
 0x29d   :  { %292 = vsyncpa [#allocation4], 1 }

</bundles_post_ra>
